<compile_context>
chip_gen: v7x
topology: tpu7x:2x2x1
jax: 0.10.0
libtpu: 0.0.40
codegen_flags: <defaults>
</compile_context>

<pallas_src>
import functools

import jax
import jax.numpy as jnp
from jax import lax
from jax.experimental import pallas as pl
from jax.experimental.pallas import tpu as pltpu


# ----------------------------------------------------------------------------
# Kernel 1: fused QKV projection  (x2d @ [Wq|Wk|Wv]) -> q (pre-scaled), k, v
# ----------------------------------------------------------------------------
def qkv_proj_kernel(x_ref, w_ref, q_ref, k_ref, v_ref, *, head_size, scale,
                    mxu_dtype):
    x = x_ref[...]
    w = w_ref[...]
    if mxu_dtype is not None:
        x = x.astype(mxu_dtype)
        w = w.astype(mxu_dtype)
    y = jnp.dot(x, w, preferred_element_type=jnp.float32)      # (tm, 3H) f32
    H = head_size
    # Fold the 1/sqrt(H) attention scale into q once, here (mem-bound kernel).
    q_ref[...] = (y[:, :H] * jnp.float32(scale)).astype(q_ref.dtype)
    k_ref[...] = y[:, H:2 * H].astype(k_ref.dtype)
    v_ref[...] = y[:, 2 * H:].astype(v_ref.dtype)
    # TODO(synk): with a single head the 16/48-lane outputs force masked
    # stores; fusing multiple heads (n_head*H >= 128 lanes) would make these
    # lane-dense, but that is out of scope for this single-head module.


def qkv_projection(x2d, w_qkv, *, head_size, scale, mxu_dtype, tm=512):
    """x2d: (M, C); w_qkv: (C, 3H)  ->  (q, k, v) each (M, H)."""
    M, C = x2d.shape
    N3 = w_qkv.shape[1]
    H = head_size

    # Pick a row tile that divides M (projection is HBM-bound; big tiles
    # amortize the ~0.35us per-grid-step overhead).
    if M <= tm:
        tm = M
    else:
        while M % tm != 0 and tm > 8:
            tm //= 2
        if M % tm != 0:
            tm = M

    out_dtype = mxu_dtype if mxu_dtype is not None else x2d.dtype
    kernel = functools.partial(qkv_proj_kernel, head_size=H, scale=scale,
                               mxu_dtype=mxu_dtype)
    return pl.pallas_call(
        kernel,
        out_shape=(jax.ShapeDtypeStruct((M, H), out_dtype),
                   jax.ShapeDtypeStruct((M, H), out_dtype),
                   jax.ShapeDtypeStruct((M, H), out_dtype)),
        grid_spec=pltpu.PrefetchScalarGridSpec(
            num_scalar_prefetch=0,
            grid=(M // tm,),
            in_specs=[
                pl.BlockSpec((tm, C), lambda i: (i, 0)),
                # Constant index_map: weights DMA'd once and held resident.
                pl.BlockSpec((C, N3), lambda i: (0, 0)),
            ],
            out_specs=(
                pl.BlockSpec((tm, H), lambda i: (i, 0)),
                pl.BlockSpec((tm, H), lambda i: (i, 0)),
                pl.BlockSpec((tm, H), lambda i: (i, 0)),
            ),
        ),
        compiler_params=pltpu.CompilerParams(
            dimension_semantics=("parallel",),
        ),
    )(x2d, w_qkv)


# ----------------------------------------------------------------------------
# Kernel 2: flash-attention forward, single head, causal, K/V resident per
#           batch element, in-kernel kv loop bounded by the causal limit.
# ----------------------------------------------------------------------------
def flash_head_kernel(q_ref, k_ref, v_ref, o_ref, *, tq, mxu_dtype):
    qi = pl.program_id(1)
    tk = tq                                   # square tiles: exactly one
    q = q_ref[...]                            # (tq, H), already scaled
    if mxu_dtype is not None:
        q = q.astype(mxu_dtype)
    H = q.shape[-1]

    neg_big = jnp.float32(-1e30)
    m0 = jnp.full((tq, 1), neg_big, jnp.float32)
    l0 = jnp.zeros((tq, 1), jnp.float32)
    a0 = jnp.zeros((tq, H), jnp.float32)

    def attend(k_t, v_t, s_mask, carry):
        m_prev, l_prev, acc_prev = carry
        if mxu_dtype is not None:
            k_t = k_t.astype(mxu_dtype)
        # Contract the H axis directly -- no explicit k.T materialization.
        s = lax.dot_general(q, k_t, (((1,), (1,)), ((), ())),
                            preferred_element_type=jnp.float32)   # (tq, tk)
        if s_mask is not None:
            s = jnp.where(s_mask, s, neg_big)
        m_new = jnp.maximum(m_prev, jnp.max(s, axis=-1, keepdims=True))
        alpha = jnp.exp(m_prev - m_new)
        p = jnp.exp(s - m_new)
        l_new = alpha * l_prev + jnp.sum(p, axis=-1, keepdims=True)
        acc_new = alpha * acc_prev + jnp.dot(
            p.astype(v_t.dtype), v_t, preferred_element_type=jnp.float32)
        return m_new, l_new, acc_new

    # Fast path: kv tiles strictly below the diagonal block need no masking.
    def body(j, carry):
        start = pl.multiple_of(j * tk, tk)
        return attend(k_ref[pl.ds(start, tk), :],
                      v_ref[pl.ds(start, tk), :], None, carry)

    carry = lax.fori_loop(0, qi, body, (m0, l0, a0))

    # Diagonal tile (tile index == qi since tq == tk): only place masking is
    # needed.  Every row has its col == row entry unmasked, so even when this
    # is the first processed tile (qi == 0) m/l never stay at the -1e30 init
    # and the -1e30 mask value cannot corrupt the online softmax.
    d_start = pl.multiple_of(qi * tk, tk)
    row = lax.broadcasted_iota(jnp.int32, (tq, tk), 0)
    col = lax.broadcasted_iota(jnp.int32, (tq, tk), 1)
    m, l, acc = attend(k_ref[pl.ds(d_start, tk), :],
                       v_ref[pl.ds(d_start, tk), :], col <= row, carry)

    # Approx reciprocal (EUP slot): ~1e-3-level relative error, fine for
    # inference; switch to exact division if reused for training.
    inv_l = pl.reciprocal(l, approx=True)
    # TODO(synk): training-mode dropout on the attention probs (via
    # pltpu.prng_random_bits) not implemented; eval-mode identity here.
    o_ref[...] = (acc * inv_l).astype(o_ref.dtype)


def flash_attention_head(q, k, v, *, tq, out_dtype, mxu_dtype):
    B, T_pad, H = q.shape
    nq = T_pad // tq
    kernel = functools.partial(flash_head_kernel, tq=tq, mxu_dtype=mxu_dtype)
    # K/V VMEM budget: 2 arrays x 2 buffers x T_pad*H*itemsize -- tiny for any
    # realistic block_size; for very large T set vmem_limit_bytes explicitly.
    return pl.pallas_call(
        kernel,
        out_shape=jax.ShapeDtypeStruct((B, T_pad, H), out_dtype),
        grid_spec=pltpu.PrefetchScalarGridSpec(
            num_scalar_prefetch=0,
            grid=(B, nq),
            in_specs=[
                pl.BlockSpec((None, tq, H), lambda b, i: (b, i, 0)),
                # Batch-only index_map: K/V DMA'd once per batch element and
                # held resident across all q tiles.
                pl.BlockSpec((None, T_pad, H), lambda b, i: (b, 0, 0)),
                pl.BlockSpec((None, T_pad, H), lambda b, i: (b, 0, 0)),
            ],
            out_specs=pl.BlockSpec((None, tq, H), lambda b, i: (b, i, 0)),
        ),
        compiler_params=pltpu.CompilerParams(
            # Both axes are independent (carry-free) -> both parallel, so on
            # v7x the two TensorCores stay busy even when B == 1.
            dimension_semantics=("parallel", "parallel"),
        ),
    )(q, k, v)


# ----------------------------------------------------------------------------
# Full Head forward
# ----------------------------------------------------------------------------
def head_forward(x, w_key, w_query, w_value, *, mxu_dtype=jnp.bfloat16,
                 tile=256, proj_tile=512):
    """x: (B, T, C); w_*: (C, H) (transposed vs torch nn.Linear weight)."""
    B, T, C = x.shape
    H = w_key.shape[1]
    scale = float(H) ** -0.5

    # Choose the flash tile and pad T up to a multiple of it (padded columns
    # are neutralized by the causal mask; padded rows are sliced off).
    if T <= tile:
        tq, T_pad = T, T
    else:
        tq = tile
        T_pad = ((T + tq - 1) // tq) * tq
    if T_pad != T:
        x = jnp.pad(x, ((0, 0), (0, T_pad - T), (0, 0)))

    # Fuse the three projection weights into one (C, 3H) operand.
    w_qkv = jnp.concatenate([w_query, w_key, w_value], axis=1)   # (C, 3H)
    if mxu_dtype is not None:
        w_qkv = w_qkv.astype(mxu_dtype)

    # (B*T_pad, C) reshape is contiguous (no copy); projection emits q/k/v as
    # three separate buffers so no XLA slice copies sit between the kernels.
    q, k, v = qkv_projection(x.reshape(B * T_pad, C), w_qkv, head_size=H,
                             scale=scale, mxu_dtype=mxu_dtype, tm=proj_tile)
    q = q.reshape(B, T_pad, H)
    k = k.reshape(B, T_pad, H)
    v = v.reshape(B, T_pad, H)

    out = flash_attention_head(q, k, v, tq=tq, out_dtype=x.dtype,
                               mxu_dtype=mxu_dtype)
    if T_pad != T:
        out = out[:, :T, :]
    return out


def head_reference(x, w_key, w_query, w_value):
    """Pure-JAX reference mirroring the PyTorch forward (eval mode)."""
    k = x @ w_key
    q = x @ w_query
    v = x @ w_value
    scale = k.shape[-1] ** (-0.5)
    wei = jnp.einsum("btd,bsd->bts", q, k) * scale
    T = x.shape[1]
    tril = jnp.tril(jnp.ones((T, T), dtype=bool))
    wei = jnp.where(tril[None, :, :], wei, -jnp.inf)
    wei = jax.nn.softmax(wei, axis=-1)
    return wei @ v


if __name__ == "__main__":
    # Shapes consistent with the module: block_size=8, n_embd=32, head_size=16
    B, T, C, H = 2, 8, 32, 16

    key = jax.random.PRNGKey(0)
    kx, kk, kq, kv = jax.random.split(key, 4)

    x = jax.random.normal(kx, (B, T, C), dtype=jnp.float32)
    # torch Linear weight is (H, C); store transposed as (C, H).
    w_key = jax.random.normal(kk, (C, H), dtype=jnp.float32) * (C ** -0.5)
    w_query = jax.random.normal(kq, (C, H), dtype=jnp.float32) * (C ** -0.5)
    w_value = jax.random.normal(kv, (C, H), dtype=jnp.float32) * (C ** -0.5)

    ref = head_reference(x, w_key, w_query, w_value)

    # Default path: bf16 q/k/v storage + MXU operands, f32 accum/softmax.
    out_bf16 = jax.block_until_ready(head_forward(x, w_key, w_query, w_value))
    assert out_bf16.shape == (B, T, H), out_bf16.shape
    assert jnp.allclose(out_bf16, ref, atol=3e-2, rtol=3e-2), "bf16 mismatch"

    # Pure f32 path.
    out_f32 = jax.block_until_ready(
        head_forward(x, w_key, w_query, w_value, mxu_dtype=None))
    assert jnp.allclose(out_f32, ref, atol=2e-3, rtol=2e-3), "f32 mismatch"

    # Multi-tile path (in-kernel causal kv loop + diagonal masking), T = 128
    # with tile = 64.
    x2 = jax.random.normal(jax.random.PRNGKey(1), (B, 128, C), jnp.float32)
    ref2 = head_reference(x2, w_key, w_query, w_value)
    out2 = jax.block_until_ready(
        head_forward(x2, w_key, w_query, w_value, mxu_dtype=None, tile=64))
    assert jnp.allclose(out2, ref2, atol=2e-3, rtol=2e-3), "multi-tile mismatch"

    # Non-multiple T (padding path), T = 96 with tile = 64 -> padded to 128.
    x3 = jax.random.normal(jax.random.PRNGKey(2), (B, 96, C), jnp.float32)
    ref3 = head_reference(x3, w_key, w_query, w_value)
    out3 = jax.block_until_ready(
        head_forward(x3, w_key, w_query, w_value, mxu_dtype=None, tile=64))
    assert out3.shape == (B, 96, H), out3.shape
    assert jnp.allclose(out3, ref3, atol=2e-3, rtol=2e-3), "padded-T mismatch"

    print("KERNEL_OK")
</pallas_src>

<mosaic_0001>
module attributes {stable_mosaic.version = 11 : i64} {
  func.func @qkv_proj_kernel(%arg0: i32, %arg1: memref<16x32xf32, #tpu.memory_space<vmem>>, %arg2: memref<32x48xbf16, #tpu.memory_space<vmem>>, %arg3: memref<16x16xbf16, #tpu.memory_space<vmem>>, %arg4: memref<16x16xbf16, #tpu.memory_space<vmem>>, %arg5: memref<16x16xbf16, #tpu.memory_space<vmem>>) attributes {dimension_semantics = [#tpu.dimension_semantics<parallel>], iteration_bounds = array<i64: 1>, scalar_prefetch = 0 : i64, scratch_operands = 0 : i64, tpu.core_type = #tpu.core_type<tc>, window_params = [{transform_indices = @transform_0, window_bounds = array<i64: 16, 32>}, {pipeline_mode = #tpu.pipeline_mode<synchronous>, transform_indices = @transform_1, window_bounds = array<i64: 32, 48>}, {transform_indices = @transform_2, window_bounds = array<i64: 16, 16>}, {transform_indices = @transform_3, window_bounds = array<i64: 16, 16>}, {transform_indices = @transform_4, window_bounds = array<i64: 16, 16>}]} {
    %c0 = arith.constant 0 : index
    %c0_0 = arith.constant 0 : index
    %0 = vector.load %arg1[%c0, %c0_0] : memref<16x32xf32, #tpu.memory_space<vmem>>, vector<16x32xf32>
    %c0_1 = arith.constant 0 : index
    %c0_2 = arith.constant 0 : index
    %1 = vector.load %arg2[%c0_1, %c0_2] : memref<32x48xbf16, #tpu.memory_space<vmem>>, vector<32x48xbf16>
    %2 = arith.truncf %0 : vector<16x32xf32> to vector<16x32xbf16>
    %cst = arith.constant dense<0.000000e+00> : vector<16x48xf32>
    %3 = tpu.matmul %2, %1, %cst {dimension_numbers = #tpu.dot_dimension_numbers<[1], [0], [0], [1], [0, 0, 1, 1], [], []>} : vector<16x32xbf16>, vector<32x48xbf16>, vector<16x48xf32> -> vector<16x48xf32>
    %4 = vector.extract_strided_slice %3 {offsets = [0, 0], sizes = [16, 16], strides = [1, 1]} : vector<16x48xf32> to vector<16x16xf32>
    %cst_3 = arith.constant 2.500000e-01 : f32
    %5 = vector.broadcast %cst_3 : f32 to vector<16x16xf32>
    %6 = arith.mulf %4, %5 : vector<16x16xf32>
    %7 = arith.truncf %6 : vector<16x16xf32> to vector<16x16xbf16>
    %c0_4 = arith.constant 0 : index
    %c0_5 = arith.constant 0 : index
    %8 = vector.load %arg3[%c0_4, %c0_5] : memref<16x16xbf16, #tpu.memory_space<vmem>>, vector<16x16xbf16>
    tpu.vector_store %arg3[%c0_4, %c0_5], %7 {strides = array<i32>} : memref<16x16xbf16, #tpu.memory_space<vmem>>, vector<16x16xbf16>,
    %9 = vector.extract_strided_slice %3 {offsets = [0, 16], sizes = [16, 16], strides = [1, 1]} : vector<16x48xf32> to vector<16x16xf32>
    %10 = arith.truncf %9 : vector<16x16xf32> to vector<16x16xbf16>
    %c0_6 = arith.constant 0 : index
    %c0_7 = arith.constant 0 : index
    %11 = vector.load %arg4[%c0_6, %c0_7] : memref<16x16xbf16, #tpu.memory_space<vmem>>, vector<16x16xbf16>
    tpu.vector_store %arg4[%c0_6, %c0_7], %10 {strides = array<i32>} : memref<16x16xbf16, #tpu.memory_space<vmem>>, vector<16x16xbf16>,
    %12 = vector.extract_strided_slice %3 {offsets = [0, 32], sizes = [16, 16], strides = [1, 1]} : vector<16x48xf32> to vector<16x16xf32>
    %13 = arith.truncf %12 : vector<16x16xf32> to vector<16x16xbf16>
    %c0_8 = arith.constant 0 : index
    %c0_9 = arith.constant 0 : index
    %14 = vector.load %arg5[%c0_8, %c0_9] : memref<16x16xbf16, #tpu.memory_space<vmem>>, vector<16x16xbf16>
    tpu.vector_store %arg5[%c0_8, %c0_9], %13 {strides = array<i32>} : memref<16x16xbf16, #tpu.memory_space<vmem>>, vector<16x16xbf16>,
    return
  }
  func.func @transform_0(%arg0: i32) -> (i32, i32) {
    %c0_i32 = arith.constant 0 : i32
    %c0_i32_0 = arith.constant 0 : i32
    return %arg0, %c0_i32 : i32, i32
  }
  func.func @transform_1(%arg0: i32) -> (i32, i32) {
    %c0_i32 = arith.constant 0 : i32
    %c0_i32_0 = arith.constant 0 : i32
    %c0_i32_1 = arith.constant 0 : i32
    return %c0_i32, %c0_i32_0 : i32, i32
  }
  func.func @transform_2(%arg0: i32) -> (i32, i32) {
    %c0_i32 = arith.constant 0 : i32
    %c0_i32_0 = arith.constant 0 : i32
    return %arg0, %c0_i32 : i32, i32
  }
  func.func @transform_3(%arg0: i32) -> (i32, i32) {
    %c0_i32 = arith.constant 0 : i32
    %c0_i32_0 = arith.constant 0 : i32
    return %arg0, %c0_i32 : i32, i32
  }
  func.func @transform_4(%arg0: i32) -> (i32, i32) {
    %c0_i32 = arith.constant 0 : i32
    %c0_i32_0 = arith.constant 0 : i32
    return %arg0, %c0_i32 : i32, i32
  }
}

</mosaic_0001>

<bundles_post_ra>
// kernel: tpu_custom_call.1
= control target key start
LH: loop header
LB: loop body
LE: loop exit
PB: predicated region body
PF: predicated region fallthrough
CT: control target
= control target key end

     0   :  { %10 = vsyncpa [#allocation3], 0  ;;  %s471_s0 = inlined_call_operand.hbm [shape: f32[16,32], index: 0, kind: input, shape index: {}]   ;;  %s472_s1 = inlined_call_operand.hbm [shape: bf16[32,48], index: 1, kind: input, shape index: {}]   ;;  %s473_s2 = inlined_call_operand.hbm [shape: bf16[16,16], index: 2, kind: output, shape index: {0}]   ;;  %s474_s3 = inlined_call_operand.hbm [shape: bf16[16,16], index: 3, kind: output, shape index: {1}]   ;;  %s475_s4 = inlined_call_operand.hbm [shape: bf16[16,16], index: 4, kind: output, shape index: {2}]  }
   0x1   :  { %11 = vsyncpa [#allocation6], 0 }
   0x2   :  { %12 = vsyncpa [#allocation4], 0 }
   0x3   :  { %13 = vsyncpa [#allocation9], 0  ;;  %s348_s15 = smov [#allocation2]   ;;  %s230_s19 = scalar_lea.hbm %s471_s0, 256 }
   0x4   :  { %s19_s16 = sshll.u32 %s348_s15, 4  ;;  %p231_p0 = scmp.ne.s32.totalorder %s471_s0, %s230_s19  ;;  %s20_s16 = int_to_ptr.vmem [resolvable:$true] %s19_s16 }
   0x5   :  { %p234_p1 = scmp.lt.u32.totalorder %s230_s19, %s471_s0 }
   0x7   :  { %p236_p2 = pnand %p234_p1, %p231_p0 }
   0x9   :  { %239 = shalt.err (!%p236_p2)
}
   0xa   :  { %s240_s24 = scalar_lea.vmem %s20_s16, 256  ;;  %p245_p4 = scmp.lt.s32.totalorder %s20_s16, %s20_s16 }
   0xb   :  { %p241_p3 = scmp.ne.s32.totalorder %s20_s16, %s240_s24  ;;  %p246_p5 = scmp.lt.s32.totalorder %s240_s24, %s240_s24 }
   0xd   :  { %p247_p6 = por %p246_p5, %p245_p4 }
   0xf   :  { %p248_p7 = pnand %p247_p6, %p241_p3 }
  0x11   :  { %251 = shalt.err (!%p248_p7)
}
  0x12   :  { %s349_s25 = smov 128   ;;  %s350_s26 = smov 8  }
  0x13   :  { %25 = dma.hbm_to_vmem [thread:$0]  %s471_s0, 256, %s20_s16, [#allocation3], %s349_s25, %s349_s25, %s350_s26  }
  0x14   :  { %s351_s29 = smov [#allocation5]   ;;  %s252_s7 = scalar_lea.hbm %s472_s1, 256 }
  0x15   :  { %s31_s30 = sshll.u32 %s351_s29, 4  ;;  %p253_p8 = scmp.ne.s32.totalorder %s472_s1, %s252_s7  ;;  %s32_s30 = int_to_ptr.vmem [resolvable:$true] %s31_s30 }
  0x16   :  { %p256_p9 = scmp.lt.u32.totalorder %s252_s7, %s472_s1 }
  0x18   :  { %p258_p10 = pnand %p256_p9, %p253_p8 }
  0x1a   :  { %261 = shalt.err (!%p258_p10)
}
  0x1b   :  { %s262_s12 = scalar_lea.vmem %s32_s30, 256  ;;  %p267_p12 = scmp.lt.s32.totalorder %s32_s30, %s32_s30 }
  0x1c   :  { %p263_p11 = scmp.ne.s32.totalorder %s32_s30, %s262_s12  ;;  %p268_p13 = scmp.lt.s32.totalorder %s262_s12, %s262_s12 }
  0x1e   :  { %p269_p0 = por %p268_p13, %p267_p12 }
  0x20   :  { %p270_p1 = pnand %p269_p0, %p263_p11 }
  0x22   :  { %273 = shalt.err (!%p270_p1)
}
  0x23   :  { %s352_s0 = smov 64   ;;  %s353_s13 = smov 4  }
  0x24   :  { %37 = dma.hbm_to_vmem [thread:$0]  %s472_s1, 256, %s32_s30, [#allocation6], %s352_s0, %s352_s0, %s353_s13  }
  0x25   :  { %340 = dma.done.wait [#allocation3], 256  }
  0x26   :  { %341 = vsyncadd [#allocation3], 4294967040 }
  0x27   :  { %342 = dma.done.wait [#allocation6], 256  }
  0x28   :  { %343 = vsyncadd [#allocation6], 4294967040  ;;  %v354_v0 = vmov 0.0   ;;  %vm355_vm0 = vmmov 0   ;;  %v228_v1 = vld [vmem:[#allocation5] sm:$0xff]   ;;  %v229_v2 = vld [vmem:[#allocation5 + $0x8] sm:$0xff]  }
  0x29   :  { %207 = vmatprep.subr.bf16.mxu0 %v354_v0  ;;  %211 = vmatprep.mubr.msk.bf16.mxu0 %vm355_vm0, %v354_v0  ;;  %v45_v3 = vld [vmem:[#allocation2] sm:$0xff]  ;;  %v46_v4 = vld [vmem:[#allocation2 + $0x8] sm:$0xff]  ;;  %vm64_vm1 = vcmask 261120   ;;  %vm119_vm2 = vcmask 125952   ;;  %s356_s1 = smov [#allocation7]   ;;  %s357_s17 = smov 96  }
  0x2a   :  { %208 = vmatpush3.bf16.msra.mxu0 %v228_v1  ;;  %v51_v5 = vpack.c.bf16 %v46_v4, %v45_v3  ;;  %s149_s16 = sshll.u32 %s356_s1, 4  ;;  %s358_s18 = smov 112   ;;  %s150_s16 = int_to_ptr.vmem [resolvable:$true] %s149_s16 }
  0x2b   :  { %209 = vmatprep.subr.bf16.mxu0 %v354_v0  ;;  %s274_s19 = scalar_lea.vmem %s150_s16, 128  ;;  %p279_p3 = scmp.lt.s32.totalorder %s150_s16, %s150_s16 }
  0x2c   :  { %p275_p2 = scmp.ne.s32.totalorder %s150_s16, %s274_s19  ;;  %p280_p4 = scmp.lt.s32.totalorder %s274_s19, %s274_s19 }
  0x2e   :  { %210 = vmatpush3.bf16.msra.mxu0 %v229_v2  ;;  %p281_p5 = por %p280_p4, %p279_p3 }
  0x30   :  { %p282_p6 = pnand %p281_p5, %p275_p2 }
  0x31   :  { %212 = vmatmul.mubr.msk.bf16.vlgmr.msra.gmra.mrb[0].mxu0 %vm64_vm1, %v51_v5 }
 0x104   :  { %v102_v6 = vpop.f32.mrb[0].mxu0 }
 0x105   :  { %v109_v7 = vmul.f32 0.25, %v102_v6  ;;  %v213_v8 = vpop.f32.mrb[1].mxu0  ;;  %v202_v9 = vpack.c.bf16 %v102_v6, %v102_v6 }
 0x106   :  { %v105_v10 = vpop.f32.mrb[2].mxu0 }
 0x107   :  { %v200_v11 = vpack.c.bf16 %v109_v7, %v109_v7  ;;  %v110_v12 = vmul.f32 0.25, %v105_v10  ;;  %136 = vrot.lane.b32.xlu1 %v202_v9, %s357_s17  ;;  %128 = vrot.lane.b32.xlu0 %v202_v9, %s358_s18  ;;  %v214_v13 = vpop.f32.mrb[3].mxu0  ;;  %v203_v15 = vpack.c.bf16 %v105_v10, %v105_v10 }
 0x109   :  { %v201_v14 = vpack.c.bf16 %v110_v12, %v110_v12  ;;  %120 = vst.msk [vmem:[#allocation7] sm:$0xf] %vm119_vm2, %v200_v11 }
 0x10b   :  { %138 = vrot.lane.b32.xlu1 %v203_v15, %s357_s17  ;;  %130 = vrot.lane.b32.xlu0 %v203_v15, %s358_s18  ;;  %121 = vst.msk [vmem:[#allocation7 + $0x4] sm:$0xf] %vm119_vm2, %v201_v14 }
 0x10c   :  { %285 = shalt.err (!%p282_p6)
}
 0x10d   :  { %s286_s22 = scalar_lea.hbm %s473_s2, 128 }
 0x10e   :  { %p287_p7 = scmp.ne.s32.totalorder %s473_s2, %s286_s22  ;;  %p290_p8 = scmp.lt.u32.totalorder %s286_s22, %s473_s2 }
 0x110   :  { %p292_p9 = pnand %p290_p8, %p287_p7 }
 0x112   :  { %295 = shalt.err (!%p292_p9)
}
 0x113   :  { %155 = dma.vmem_to_hbm [thread:$0]  %s150_s16, 128, %s473_s2, [#allocation4], %s352_s0, %s352_s0, %s353_s13  }
 0x114   :  { %s359_s29 = smov [#allocation8]   ;;  %s360_s5 = smov [#allocation10]  }
 0x115   :  { %s161_s30 = sshll.u32 %s359_s29, 4  ;;  %s173_s6 = sshll.u32 %s360_s5, 4  ;;  %s162_s30 = int_to_ptr.vmem [resolvable:$true] %s161_s30  ;;  %s432_s6 = int_to_ptr.vmem [resolvable:$true] %s173_s6 }
 0x116   :  { %s296_s2 = scalar_lea.vmem %s162_s30, 128  ;;  %p301_p11 = scmp.lt.s32.totalorder %s162_s30, %s162_s30 }
 0x117   :  { %p297_p10 = scmp.ne.s32.totalorder %s162_s30, %s296_s2  ;;  %p302_p12 = scmp.lt.s32.totalorder %s296_s2, %s296_s2 }
 0x119   :  { %p303_p13 = por %p302_p12, %p301_p11 }
 0x11b   :  { %p304_p0 = pnand %p303_p13, %p297_p10 }
 0x179   :  { %v137_v16 = vpop.permute.xlu1 %136  ;;  %v129_v17 = vpop.permute.xlu0 %128 }
 0x17a   :  { %142 = vst.msk [vmem:[#allocation10] sm:$0xf] %vm119_vm2, %v137_v16  ;;  %134 = vst.msk [vmem:[#allocation8] sm:$0xf] %vm119_vm2, %v129_v17 }
 0x17d   :  { %v139_v18 = vpop.permute.xlu1 %138  ;;  %v131_v19 = vpop.permute.xlu0 %130 }
 0x17e   :  { %143 = vst.msk [vmem:[#allocation10 + $0x4] sm:$0xf] %vm119_vm2, %v139_v18  ;;  %135 = vst.msk [vmem:[#allocation8 + $0x4] sm:$0xf] %vm119_vm2, %v131_v19 }
 0x17f   :  { %307 = shalt.err (!%p304_p0)
}
 0x180   :  { %s308_s9 = scalar_lea.hbm %s474_s3, 128 }
 0x181   :  { %p309_p1 = scmp.ne.s32.totalorder %s474_s3, %s308_s9  ;;  %p312_p2 = scmp.lt.u32.totalorder %s308_s9, %s474_s3 }
 0x183   :  { %p314_p3 = pnand %p312_p2, %p309_p1 }
 0x185   :  { %317 = shalt.err (!%p314_p3)
}
 0x186   :  { %167 = dma.vmem_to_hbm [thread:$0]  %s162_s30, 128, %s474_s3, [#allocation9], %s352_s0, %s352_s0, %s353_s13  }
 0x187   :  { %s318_s16 = scalar_lea.vmem %s432_s6, 128  ;;  %p323_p5 = scmp.lt.s32.totalorder %s432_s6, %s432_s6 }
 0x188   :  { %p319_p4 = scmp.ne.s32.totalorder %s432_s6, %s318_s16  ;;  %p324_p6 = scmp.lt.s32.totalorder %s318_s16, %s318_s16 }
 0x18a   :  { %p325_p7 = por %p324_p6, %p323_p5 }
 0x18c   :  { %p326_p8 = pnand %p325_p7, %p319_p4 }
 0x18e   :  { %329 = shalt.err (!%p326_p8)
}
 0x18f   :  { %s330_s19 = scalar_lea.hbm %s475_s4, 128 }
 0x190   :  { %p331_p9 = scmp.ne.s32.totalorder %s475_s4, %s330_s19  ;;  %p334_p10 = scmp.lt.u32.totalorder %s330_s19, %s475_s4 }
 0x192   :  { %p336_p11 = pnand %p334_p10, %p331_p9 }
 0x194   :  { %339 = shalt.err (!%p336_p11)
}
 0x195   :  { %179 = dma.vmem_to_hbm [thread:$0]  %s432_s6, 128, %s475_s4, [#allocation9], %s352_s0, %s352_s0, %s353_s13  }
 0x196   :  { %344 = dma.done.wait [#allocation4], 128  }
 0x197   :  { %345 = vsyncadd [#allocation4], 4294967168 }
 0x198   :  { %346 = dma.done.wait [#allocation9], 256  }
 0x199   :  { %347 = vsyncadd [#allocation9], 4294967040 }
 0x19a   :  { %189 = vsyncpa [#allocation3], 1 }
 0x19b   :  { %190 = vsyncpa [#allocation6], 1 }
 0x19c   :  { %191 = vsyncpa [#allocation4], 1 }
 0x19d   :  { %192 = vsyncpa [#allocation9], 1 }

</bundles_post_ra>
